<compile_context>
chip_gen: v6e
topology: v6e:2x2x1
jax: 0.10.0
libtpu: 0.0.40
codegen_flags: <defaults>
</compile_context>

<pallas_src>
import math

import jax
import jax.numpy as jnp
import numpy as np
from jax.experimental import pallas as pl
from jax.experimental.pallas import tpu as pltpu

# ---- small config (consistent with LlamaConfig fields the module uses) ----
B = 2            # batch
S = 8            # seq_len
H = 32           # hidden_size
NH = 4           # num_attention_heads
HD = H // NH     # head_dim
INTER = 64       # intermediate_size
EPS = 1e-6       # rms_norm_eps
ROPE_THETA = 10000.0
BS = B * S       # flattened token axis


def decoder_layer_kernel(x_ref, wqkv_ref, wo_ref, wgu_ref, wd_ref,
                         gin_ref, gpost_ref, rot_ref, cos_ref, sin_ref,
                         mask_ref, out_ref):
    x = x_ref[...]                      # (BS, H) f32 -- residual #1
    cos = cos_ref[...]                  # (BS, H)   per-head-tiled RoPE cos
    sin = sin_ref[...]                  # (BS, H)
    mask = mask_ref[...]                # (BS, BS)  block-diag additive causal mask
    rot = rot_ref[...]                  # (H, H)    signed block-permutation (rotate_half)

    # ---- input_layernorm (LlamaRMSNorm), f32 ----
    var = jnp.mean(x * x, axis=-1, keepdims=True)
    xn = x * jax.lax.rsqrt(var + EPS) * gin_ref[...]

    # ---- fused q/k/v projection: one (BS,H)x(H,3H) matmul, bf16 in / f32 acc ----
    qkv = jnp.dot(xn.astype(jnp.bfloat16), wqkv_ref[...],
                  preferred_element_type=jnp.float32)        # (BS, 3H)
    q = qkv[:, :H]
    k = qkv[:, H:2 * H]
    v = qkv[:, 2 * H:]

    # ---- RoPE for all heads at once: rotate_half(q) == q @ rot (no lane concats) ----
    q = q * cos + jnp.dot(q, rot, preferred_element_type=jnp.float32) * sin
    k = k * cos + jnp.dot(k, rot, preferred_element_type=jnp.float32) * sin

    # ---- per-head attention; output accumulated through sublane slices of Wo ----
    inv_sqrt_hd = 1.0 / math.sqrt(HD)
    neg_min = jnp.finfo(jnp.float32).min
    attn = jnp.zeros_like(x)                                  # (BS, H) f32
    for h in range(NH):                                       # static loop, NH=4
        lo = h * HD
        qh = q[:, lo:lo + HD]                                 # (BS, HD)
        kh = k[:, lo:lo + HD]
        vh = v[:, lo:lo + HD]

        # scores = qh @ kh^T via dot_general (no explicit transpose materialized)
        scores = jax.lax.dot_general(
            qh, kh, (((1,), (1,)), ((), ())),
            preferred_element_type=jnp.float32) * inv_sqrt_hd  # (BS, BS)
        scores = jnp.maximum(scores + mask, neg_min)

        # softmax in f32; reciprocal on the EUP slot
        scores = scores - jnp.max(scores, axis=-1, keepdims=True)
        p = jnp.exp(scores)
        p = p * pl.reciprocal(jnp.sum(p, axis=-1, keepdims=True), approx=True)

        head_out = jnp.dot(p, vh, preferred_element_type=jnp.float32)  # (BS, HD)
        # accumulate directly into the output projection: head_out @ Wo[h*HD:(h+1)*HD, :]
        attn = attn + jnp.dot(head_out.astype(jnp.bfloat16),
                              wo_ref[lo:lo + HD, :],
                              preferred_element_type=jnp.float32)

    # ---- residual #1 ----
    h1 = x + attn

    # ---- post_attention_layernorm ----
    var2 = jnp.mean(h1 * h1, axis=-1, keepdims=True)
    h1n = h1 * jax.lax.rsqrt(var2 + EPS) * gpost_ref[...]

    # ---- LlamaMLP: down( silu(gate(x)) * up(x) ), fused gate/up (128 lanes) ----
    gu = jnp.dot(h1n.astype(jnp.bfloat16), wgu_ref[...],
                 preferred_element_type=jnp.float32)          # (BS, 2*INTER) = (16,128)
    gate = gu[:, :INTER]
    up = gu[:, INTER:]
    act = gate * jax.nn.sigmoid(gate) * up                    # SiLU(gate) * up
    mlp = jnp.dot(act.astype(jnp.bfloat16), wd_ref[...],
                  preferred_element_type=jnp.float32)         # (BS, H)

    out_ref[...] = h1 + mlp


def llama_decoder_layer(x, params, cos, sin):
    """x: (B,S,H) f32. params: f32 weights as (in,out). cos/sin: (S,HD)."""
    wq, wk, wv, wo, wg, wu, wd, gin, gpost = params
    B_, S_, H_ = x.shape
    BS_ = B_ * S_

    # ---- host-side layout plumbing (free relative to in-kernel work) ----
    # fused + bf16-cast weights (f32 accumulation inside the kernel)
    wqkv = jnp.concatenate([wq, wk, wv], axis=1).astype(jnp.bfloat16)   # (H, 3H)
    wgu = jnp.concatenate([wg, wu], axis=1).astype(jnp.bfloat16)        # (H, 2*INTER)
    wo_b = wo.astype(jnp.bfloat16)
    wd_b = wd.astype(jnp.bfloat16)

    # RoPE tables tiled to the flattened token axis / all heads: (BS, H)
    cos_full = jnp.tile(cos, (B_, NH))
    sin_full = jnp.tile(sin, (B_, NH))

    # rotate_half as a signed block-permutation matrix (one per head, block-diag)
    half = HD // 2
    blk = jnp.zeros((HD, HD), jnp.float32)
    blk = blk.at[jnp.arange(half), jnp.arange(half) + half].set(1.0)
    blk = blk.at[jnp.arange(half) + half, jnp.arange(half)].set(-1.0)
    rot = jnp.kron(jnp.eye(NH, dtype=jnp.float32), blk)                 # (H, H)

    # block-diagonal additive causal mask over the flattened (B*S) token axis
    idx = jnp.arange(BS_)
    bid = idx // S_
    pos = idx % S_
    allowed = (bid[:, None] == bid[None, :]) & (pos[None, :] <= pos[:, None])
    mask = jnp.where(allowed, 0.0, jnp.finfo(jnp.float32).min).astype(jnp.float32)

    x2 = x.reshape(BS_, H_)

    vmem = pl.BlockSpec(memory_space=pltpu.MemorySpace.VMEM)
    out = pl.pallas_call(
        decoder_layer_kernel,
        out_shape=jax.ShapeDtypeStruct((BS_, H_), jnp.float32),
        in_specs=[vmem] * 11,
        out_specs=vmem,
    )(x2, wqkv, wo_b, wgu, wd_b, gin, gpost, rot, cos_full, sin_full, mask)
    return out.reshape(B_, S_, H_)


# ---------------- pure-JAX f32 reference (mirrors PyTorch semantics) ----------------
def reference(x, params, cos, sin):
    wq, wk, wv, wo, wg, wu, wd, gin, gpost = params

    def rmsnorm(h, g):
        v = jnp.mean(h * h, axis=-1, keepdims=True)
        return h * jax.lax.rsqrt(v + EPS) * g[0]

    def rot_half(t):  # t: (..., HD)
        half = t.shape[-1] // 2
        return jnp.concatenate([-t[..., half:], t[..., :half]], axis=-1)

    # per-sequence causal additive mask (S, S)
    i = jnp.arange(S)[:, None]
    j = jnp.arange(S)[None, :]
    mask = jnp.where(j <= i, 0.0, jnp.finfo(jnp.float32).min).astype(jnp.float32)

    xn = rmsnorm(x, gin)
    q = xn @ wq
    k = xn @ wk
    v = xn @ wv
    q = q.reshape(B, S, NH, HD).transpose(0, 2, 1, 3)
    k = k.reshape(B, S, NH, HD).transpose(0, 2, 1, 3)
    v = v.reshape(B, S, NH, HD).transpose(0, 2, 1, 3)
    c = cos[None, None]
    s = sin[None, None]
    q = q * c + rot_half(q) * s
    k = k * c + rot_half(k) * s
    scores = jnp.einsum('bhqd,bhkd->bhqk', q, k) / math.sqrt(HD)
    scores = scores + mask[None, None]
    scores = jnp.maximum(scores, jnp.finfo(jnp.float32).min)
    p = jax.nn.softmax(scores, axis=-1)
    attn = jnp.einsum('bhqk,bhkd->bhqd', p, v)
    attn = attn.transpose(0, 2, 1, 3).reshape(B, S, H) @ wo
    h1 = x + attn
    h1n = rmsnorm(h1, gpost)
    gate = h1n @ wg
    up = h1n @ wu
    mlp = (jax.nn.silu(gate) * up) @ wd
    return h1 + mlp


if __name__ == "__main__":
    key = jax.random.PRNGKey(0)
    ks = jax.random.split(key, 10)
    scale = 0.05
    x = jax.random.normal(ks[0], (B, S, H), jnp.float32)

    # weights stored as (in_features, out_features), i.e. transposed nn.Linear.weight
    wq = jax.random.normal(ks[1], (H, H), jnp.float32) * scale
    wk = jax.random.normal(ks[2], (H, H), jnp.float32) * scale
    wv = jax.random.normal(ks[3], (H, H), jnp.float32) * scale
    wo = jax.random.normal(ks[4], (H, H), jnp.float32) * scale
    wg = jax.random.normal(ks[5], (H, INTER), jnp.float32) * scale
    wu = jax.random.normal(ks[6], (H, INTER), jnp.float32) * scale
    wd = jax.random.normal(ks[7], (INTER, H), jnp.float32) * scale
    gin = jnp.ones((1, H), jnp.float32)
    gpost = jnp.ones((1, H), jnp.float32)
    params = (wq, wk, wv, wo, wg, wu, wd, gin, gpost)

    # RoPE tables (position_ids = arange(S) per sequence, max_id = None)
    inv_freq = 1.0 / (ROPE_THETA ** (jnp.arange(0, HD, 2, dtype=jnp.float32) / HD))
    pos = jnp.arange(S, dtype=jnp.float32)
    freqs = jnp.outer(pos, inv_freq)                     # (S, HD/2)
    emb = jnp.concatenate([freqs, freqs], axis=-1)       # (S, HD)
    cos = jnp.cos(emb)
    sin = jnp.sin(emb)

    out = llama_decoder_layer(x, params, cos, sin)
    out = jax.block_until_ready(out)

    ref = reference(x, params, cos, sin)
    # tolerance relaxed vs the pure-f32 version because weight matmuls use bf16
    # operands (f32 accumulation); observed error is well under 1e-2.
    np.testing.assert_allclose(np.asarray(out), np.asarray(ref), rtol=2e-2, atol=2e-2)
    print("KERNEL_OK")
</pallas_src>

<mosaic_0001>
module attributes {stable_mosaic.version = 11 : i64} {
  func.func @decoder_layer_kernel(%arg0: memref<16x32xf32, #tpu.memory_space<vmem>>, %arg1: memref<32x96xbf16, #tpu.memory_space<vmem>>, %arg2: memref<32x32xbf16, #tpu.memory_space<vmem>>, %arg3: memref<32x128xbf16, #tpu.memory_space<vmem>>, %arg4: memref<64x32xbf16, #tpu.memory_space<vmem>>, %arg5: memref<1x32xf32, #tpu.memory_space<vmem>>, %arg6: memref<1x32xf32, #tpu.memory_space<vmem>>, %arg7: memref<32x32xf32, #tpu.memory_space<vmem>>, %arg8: memref<16x32xf32, #tpu.memory_space<vmem>>, %arg9: memref<16x32xf32, #tpu.memory_space<vmem>>, %arg10: memref<16x16xf32, #tpu.memory_space<vmem>>, %arg11: memref<16x32xf32, #tpu.memory_space<vmem>>) attributes {dimension_semantics = [], scalar_prefetch = 0 : i64, scratch_operands = 0 : i64, tpu.core_type = #tpu.core_type<tc>} {
    %c0 = arith.constant 0 : index
    %c0_0 = arith.constant 0 : index
    %0 = vector.load %arg0[%c0, %c0_0] : memref<16x32xf32, #tpu.memory_space<vmem>>, vector<16x32xf32>
    %c0_1 = arith.constant 0 : index
    %c0_2 = arith.constant 0 : index
    %1 = vector.load %arg8[%c0_1, %c0_2] : memref<16x32xf32, #tpu.memory_space<vmem>>, vector<16x32xf32>
    %c0_3 = arith.constant 0 : index
    %c0_4 = arith.constant 0 : index
    %2 = vector.load %arg9[%c0_3, %c0_4] : memref<16x32xf32, #tpu.memory_space<vmem>>, vector<16x32xf32>
    %c0_5 = arith.constant 0 : index
    %c0_6 = arith.constant 0 : index
    %3 = vector.load %arg10[%c0_5, %c0_6] : memref<16x16xf32, #tpu.memory_space<vmem>>, vector<16x16xf32>
    %c0_7 = arith.constant 0 : index
    %c0_8 = arith.constant 0 : index
    %4 = vector.load %arg7[%c0_7, %c0_8] : memref<32x32xf32, #tpu.memory_space<vmem>>, vector<32x32xf32>
    %5 = arith.mulf %0, %0 : vector<16x32xf32>
    %cst = arith.constant dense<0.000000e+00> : vector<16xf32>
    %6 = vector.multi_reduction <add>, %5, %cst [1] : vector<16x32xf32> to vector<16xf32>
    %7 = vector.shape_cast %6 : vector<16xf32> to vector<16x1xf32>
    %cst_9 = arith.constant 3.200000e+01 : f32
    %8 = vector.broadcast %cst_9 : f32 to vector<16x1xf32>
    %9 = arith.divf %7, %8 : vector<16x1xf32>
    %cst_10 = arith.constant 9.99999997E-7 : f32
    %10 = vector.broadcast %cst_10 : f32 to vector<16x1xf32>
    %11 = arith.addf %9, %10 : vector<16x1xf32>
    %12 = math.rsqrt %11 : vector<16x1xf32>
    %13 = vector.broadcast %12 : vector<16x1xf32> to vector<16x32xf32>
    %14 = arith.mulf %0, %13 : vector<16x32xf32>
    %c0_11 = arith.constant 0 : index
    %c0_12 = arith.constant 0 : index
    %15 = vector.load %arg5[%c0_11, %c0_12] : memref<1x32xf32, #tpu.memory_space<vmem>>, vector<1x32xf32>
    %16 = vector.broadcast %15 : vector<1x32xf32> to vector<16x32xf32>
    %17 = arith.mulf %14, %16 : vector<16x32xf32>
    %18 = arith.truncf %17 : vector<16x32xf32> to vector<16x32xbf16>
    %c0_13 = arith.constant 0 : index
    %c0_14 = arith.constant 0 : index
    %19 = vector.load %arg1[%c0_13, %c0_14] : memref<32x96xbf16, #tpu.memory_space<vmem>>, vector<32x96xbf16>
    %cst_15 = arith.constant dense<0.000000e+00> : vector<16x96xf32>
    %20 = tpu.matmul %18, %19, %cst_15 {dimension_numbers = #tpu.dot_dimension_numbers<[1], [0], [0], [1], [0, 0, 1, 1], [], []>} : vector<16x32xbf16>, vector<32x96xbf16>, vector<16x96xf32> -> vector<16x96xf32>
    %21 = vector.extract_strided_slice %20 {offsets = [0, 0], sizes = [16, 32], strides = [1, 1]} : vector<16x96xf32> to vector<16x32xf32>
    %22 = vector.extract_strided_slice %20 {offsets = [0, 32], sizes = [16, 32], strides = [1, 1]} : vector<16x96xf32> to vector<16x32xf32>
    %23 = vector.extract_strided_slice %20 {offsets = [0, 64], sizes = [16, 32], strides = [1, 1]} : vector<16x96xf32> to vector<16x32xf32>
    %24 = arith.mulf %21, %1 : vector<16x32xf32>
    %cst_16 = arith.constant dense<0.000000e+00> : vector<16x32xf32>
    %25 = tpu.matmul %21, %4, %cst_16 {dimension_numbers = #tpu.dot_dimension_numbers<[1], [0], [0], [1], [0, 0, 1, 1], [], []>} : vector<16x32xf32>, vector<32x32xf32>, vector<16x32xf32> -> vector<16x32xf32>
    %26 = arith.mulf %25, %2 : vector<16x32xf32>
    %27 = arith.addf %24, %26 : vector<16x32xf32>
    %28 = arith.mulf %22, %1 : vector<16x32xf32>
    %cst_17 = arith.constant dense<0.000000e+00> : vector<16x32xf32>
    %29 = tpu.matmul %22, %4, %cst_17 {dimension_numbers = #tpu.dot_dimension_numbers<[1], [0], [0], [1], [0, 0, 1, 1], [], []>} : vector<16x32xf32>, vector<32x32xf32>, vector<16x32xf32> -> vector<16x32xf32>
    %30 = arith.mulf %29, %2 : vector<16x32xf32>
    %31 = arith.addf %28, %30 : vector<16x32xf32>
    %cst_18 = arith.constant 0.000000e+00 : f32
    %32 = vector.broadcast %cst_18 : f32 to vector<16x32xf32>
    %33 = vector.extract_strided_slice %27 {offsets = [0, 0], sizes = [16, 8], strides = [1, 1]} : vector<16x32xf32> to vector<16x8xf32>
    %34 = vector.extract_strided_slice %31 {offsets = [0, 0], sizes = [16, 8], strides = [1, 1]} : vector<16x32xf32> to vector<16x8xf32>
    %35 = vector.extract_strided_slice %23 {offsets = [0, 0], sizes = [16, 8], strides = [1, 1]} : vector<16x32xf32> to vector<16x8xf32>
    %cst_19 = arith.constant dense<0.000000e+00> : vector<16x16xf32>
    %36 = tpu.matmul %33, %34, %cst_19 {dimension_numbers = #tpu.dot_dimension_numbers<[1], [1], [0], [0], [0, 0, 1, 0], [], []>} : vector<16x8xf32>, vector<16x8xf32>, vector<16x16xf32> -> vector<16x16xf32>
    %cst_20 = arith.constant 0.353553385 : f32
    %37 = vector.broadcast %cst_20 : f32 to vector<16x16xf32>
    %38 = arith.mulf %36, %37 : vector<16x16xf32>
    %39 = arith.addf %38, %3 : vector<16x16xf32>
    %cst_21 = arith.constant -3.40282347E+38 : f32
    %40 = vector.broadcast %cst_21 : f32 to vector<16x16xf32>
    %41 = arith.maximumf %39, %40 : vector<16x16xf32>
    %cst_22 = arith.constant dense<0xFF800000> : vector<16xf32>
    %42 = vector.multi_reduction <maximumf>, %41, %cst_22 [1] : vector<16x16xf32> to vector<16xf32>
    %43 = vector.shape_cast %42 : vector<16xf32> to vector<16x1xf32>
    %44 = vector.broadcast %43 : vector<16x1xf32> to vector<16x16xf32>
    %45 = arith.subf %41, %44 : vector<16x16xf32>
    %46 = math.exp %45 : vector<16x16xf32>
    %cst_23 = arith.constant dense<0.000000e+00> : vector<16xf32>
    %47 = vector.multi_reduction <add>, %46, %cst_23 [1] : vector<16x16xf32> to vector<16xf32>
    %48 = vector.shape_cast %47 : vector<16xf32> to vector<16x1xf32>
    %49 = tpu.reciprocal %48 {approx = true} : vector<16x1xf32> -> vector<16x1xf32>
    %50 = vector.broadcast %49 : vector<16x1xf32> to vector<16x16xf32>
    %51 = arith.mulf %46, %50 : vector<16x16xf32>
    %cst_24 = arith.constant dense<0.000000e+00> : vector<16x8xf32>
    %52 = tpu.matmul %51, %35, %cst_24 {dimension_numbers = #tpu.dot_dimension_numbers<[1], [0], [0], [1], [0, 0, 1, 1], [], []>} : vector<16x16xf32>, vector<16x8xf32>, vector<16x8xf32> -> vector<16x8xf32>
    %53 = arith.truncf %52 : vector<16x8xf32> to vector<16x8xbf16>
    %c0_25 = arith.constant 0 : index
    %c0_26 = arith.constant 0 : index
    %54 = vector.load %arg2[%c0_25, %c0_26] : memref<32x32xbf16, #tpu.memory_space<vmem>>, vector<8x32xbf16>
    %cst_27 = arith.constant dense<0.000000e+00> : vector<16x32xf32>
    %55 = tpu.matmul %53, %54, %cst_27 {dimension_numbers = #tpu.dot_dimension_numbers<[1], [0], [0], [1], [0, 0, 1, 1], [], []>} : vector<16x8xbf16>, vector<8x32xbf16>, vector<16x32xf32> -> vector<16x32xf32>
    %56 = arith.addf %32, %55 : vector<16x32xf32>
    %57 = vector.extract_strided_slice %27 {offsets = [0, 8], sizes = [16, 8], strides = [1, 1]} : vector<16x32xf32> to vector<16x8xf32>
    %58 = vector.extract_strided_slice %31 {offsets = [0, 8], sizes = [16, 8], strides = [1, 1]} : vector<16x32xf32> to vector<16x8xf32>
    %59 = vector.extract_strided_slice %23 {offsets = [0, 8], sizes = [16, 8], strides = [1, 1]} : vector<16x32xf32> to vector<16x8xf32>
    %cst_28 = arith.constant dense<0.000000e+00> : vector<16x16xf32>
    %60 = tpu.matmul %57, %58, %cst_28 {dimension_numbers = #tpu.dot_dimension_numbers<[1], [1], [0], [0], [0, 0, 1, 0], [], []>} : vector<16x8xf32>, vector<16x8xf32>, vector<16x16xf32> -> vector<16x16xf32>
    %cst_29 = arith.constant 0.353553385 : f32
    %61 = vector.broadcast %cst_29 : f32 to vector<16x16xf32>
    %62 = arith.mulf %60, %61 : vector<16x16xf32>
    %63 = arith.addf %62, %3 : vector<16x16xf32>
    %cst_30 = arith.constant -3.40282347E+38 : f32
    %64 = vector.broadcast %cst_30 : f32 to vector<16x16xf32>
    %65 = arith.maximumf %63, %64 : vector<16x16xf32>
    %cst_31 = arith.constant dense<0xFF800000> : vector<16xf32>
    %66 = vector.multi_reduction <maximumf>, %65, %cst_31 [1] : vector<16x16xf32> to vector<16xf32>
    %67 = vector.shape_cast %66 : vector<16xf32> to vector<16x1xf32>
    %68 = vector.broadcast %67 : vector<16x1xf32> to vector<16x16xf32>
    %69 = arith.subf %65, %68 : vector<16x16xf32>
    %70 = math.exp %69 : vector<16x16xf32>
    %cst_32 = arith.constant dense<0.000000e+00> : vector<16xf32>
    %71 = vector.multi_reduction <add>, %70, %cst_32 [1] : vector<16x16xf32> to vector<16xf32>
    %72 = vector.shape_cast %71 : vector<16xf32> to vector<16x1xf32>
    %73 = tpu.reciprocal %72 {approx = true} : vector<16x1xf32> -> vector<16x1xf32>
    %74 = vector.broadcast %73 : vector<16x1xf32> to vector<16x16xf32>
    %75 = arith.mulf %70, %74 : vector<16x16xf32>
    %cst_33 = arith.constant dense<0.000000e+00> : vector<16x8xf32>
    %76 = tpu.matmul %75, %59, %cst_33 {dimension_numbers = #tpu.dot_dimension_numbers<[1], [0], [0], [1], [0, 0, 1, 1], [], []>} : vector<16x16xf32>, vector<16x8xf32>, vector<16x8xf32> -> vector<16x8xf32>
    %77 = arith.truncf %76 : vector<16x8xf32> to vector<16x8xbf16>
    %c8 = arith.constant 8 : index
    %c0_34 = arith.constant 0 : index
    %78 = vector.load %arg2[%c8, %c0_34] : memref<32x32xbf16, #tpu.memory_space<vmem>>, vector<8x32xbf16>
    %cst_35 = arith.constant dense<0.000000e+00> : vector<16x32xf32>
    %79 = tpu.matmul %77, %78, %cst_35 {dimension_numbers = #tpu.dot_dimension_numbers<[1], [0], [0], [1], [0, 0, 1, 1], [], []>} : vector<16x8xbf16>, vector<8x32xbf16>, vector<16x32xf32> -> vector<16x32xf32>
    %80 = arith.addf %56, %79 : vector<16x32xf32>
    %81 = vector.extract_strided_slice %27 {offsets = [0, 16], sizes = [16, 8], strides = [1, 1]} : vector<16x32xf32> to vector<16x8xf32>
    %82 = vector.extract_strided_slice %31 {offsets = [0, 16], sizes = [16, 8], strides = [1, 1]} : vector<16x32xf32> to vector<16x8xf32>
    %83 = vector.extract_strided_slice %23 {offsets = [0, 16], sizes = [16, 8], strides = [1, 1]} : vector<16x32xf32> to vector<16x8xf32>
    %cst_36 = arith.constant dense<0.000000e+00> : vector<16x16xf32>
    %84 = tpu.matmul %81, %82, %cst_36 {dimension_numbers = #tpu.dot_dimension_numbers<[1], [1], [0], [0], [0, 0, 1, 0], [], []>} : vector<16x8xf32>, vector<16x8xf32>, vector<16x16xf32> -> vector<16x16xf32>
    %cst_37 = arith.constant 0.353553385 : f32
    %85 = vector.broadcast %cst_37 : f32 to vector<16x16xf32>
    %86 = arith.mulf %84, %85 : vector<16x16xf32>
    %87 = arith.addf %86, %3 : vector<16x16xf32>
    %cst_38 = arith.constant -3.40282347E+38 : f32
    %88 = vector.broadcast %cst_38 : f32 to vector<16x16xf32>
    %89 = arith.maximumf %87, %88 : vector<16x16xf32>
    %cst_39 = arith.constant dense<0xFF800000> : vector<16xf32>
    %90 = vector.multi_reduction <maximumf>, %89, %cst_39 [1] : vector<16x16xf32> to vector<16xf32>
    %91 = vector.shape_cast %90 : vector<16xf32> to vector<16x1xf32>
    %92 = vector.broadcast %91 : vector<16x1xf32> to vector<16x16xf32>
    %93 = arith.subf %89, %92 : vector<16x16xf32>
    %94 = math.exp %93 : vector<16x16xf32>
    %cst_40 = arith.constant dense<0.000000e+00> : vector<16xf32>
    %95 = vector.multi_reduction <add>, %94, %cst_40 [1] : vector<16x16xf32> to vector<16xf32>
    %96 = vector.shape_cast %95 : vector<16xf32> to vector<16x1xf32>
    %97 = tpu.reciprocal %96 {approx = true} : vector<16x1xf32> -> vector<16x1xf32>
    %98 = vector.broadcast %97 : vector<16x1xf32> to vector<16x16xf32>
    %99 = arith.mulf %94, %98 : vector<16x16xf32>
    %cst_41 = arith.constant dense<0.000000e+00> : vector<16x8xf32>
    %100 = tpu.matmul %99, %83, %cst_41 {dimension_numbers = #tpu.dot_dimension_numbers<[1], [0], [0], [1], [0, 0, 1, 1], [], []>} : vector<16x16xf32>, vector<16x8xf32>, vector<16x8xf32> -> vector<16x8xf32>
    %101 = arith.truncf %100 : vector<16x8xf32> to vector<16x8xbf16>
    %c16 = arith.constant 16 : index
    %c0_42 = arith.constant 0 : index
    %102 = vector.load %arg2[%c16, %c0_42] : memref<32x32xbf16, #tpu.memory_space<vmem>>, vector<8x32xbf16>
    %cst_43 = arith.constant dense<0.000000e+00> : vector<16x32xf32>
    %103 = tpu.matmul %101, %102, %cst_43 {dimension_numbers = #tpu.dot_dimension_numbers<[1], [0], [0], [1], [0, 0, 1, 1], [], []>} : vector<16x8xbf16>, vector<8x32xbf16>, vector<16x32xf32> -> vector<16x32xf32>
    %104 = arith.addf %80, %103 : vector<16x32xf32>
    %105 = vector.extract_strided_slice %27 {offsets = [0, 24], sizes = [16, 8], strides = [1, 1]} : vector<16x32xf32> to vector<16x8xf32>
    %106 = vector.extract_strided_slice %31 {offsets = [0, 24], sizes = [16, 8], strides = [1, 1]} : vector<16x32xf32> to vector<16x8xf32>
    %107 = vector.extract_strided_slice %23 {offsets = [0, 24], sizes = [16, 8], strides = [1, 1]} : vector<16x32xf32> to vector<16x8xf32>
    %cst_44 = arith.constant dense<0.000000e+00> : vector<16x16xf32>
    %108 = tpu.matmul %105, %106, %cst_44 {dimension_numbers = #tpu.dot_dimension_numbers<[1], [1], [0], [0], [0, 0, 1, 0], [], []>} : vector<16x8xf32>, vector<16x8xf32>, vector<16x16xf32> -> vector<16x16xf32>
    %cst_45 = arith.constant 0.353553385 : f32
    %109 = vector.broadcast %cst_45 : f32 to vector<16x16xf32>
    %110 = arith.mulf %108, %109 : vector<16x16xf32>
    %111 = arith.addf %110, %3 : vector<16x16xf32>
    %cst_46 = arith.constant -3.40282347E+38 : f32
    %112 = vector.broadcast %cst_46 : f32 to vector<16x16xf32>
    %113 = arith.maximumf %111, %112 : vector<16x16xf32>
    %cst_47 = arith.constant dense<0xFF800000> : vector<16xf32>
    %114 = vector.multi_reduction <maximumf>, %113, %cst_47 [1] : vector<16x16xf32> to vector<16xf32>
    %115 = vector.shape_cast %114 : vector<16xf32> to vector<16x1xf32>
    %116 = vector.broadcast %115 : vector<16x1xf32> to vector<16x16xf32>
    %117 = arith.subf %113, %116 : vector<16x16xf32>
    %118 = math.exp %117 : vector<16x16xf32>
    %cst_48 = arith.constant dense<0.000000e+00> : vector<16xf32>
    %119 = vector.multi_reduction <add>, %118, %cst_48 [1] : vector<16x16xf32> to vector<16xf32>
    %120 = vector.shape_cast %119 : vector<16xf32> to vector<16x1xf32>
    %121 = tpu.reciprocal %120 {approx = true} : vector<16x1xf32> -> vector<16x1xf32>
    %122 = vector.broadcast %121 : vector<16x1xf32> to vector<16x16xf32>
    %123 = arith.mulf %118, %122 : vector<16x16xf32>
    %cst_49 = arith.constant dense<0.000000e+00> : vector<16x8xf32>
    %124 = tpu.matmul %123, %107, %cst_49 {dimension_numbers = #tpu.dot_dimension_numbers<[1], [0], [0], [1], [0, 0, 1, 1], [], []>} : vector<16x16xf32>, vector<16x8xf32>, vector<16x8xf32> -> vector<16x8xf32>
    %125 = arith.truncf %124 : vector<16x8xf32> to vector<16x8xbf16>
    %c24 = arith.constant 24 : index
    %c0_50 = arith.constant 0 : index
    %126 = vector.load %arg2[%c24, %c0_50] : memref<32x32xbf16, #tpu.memory_space<vmem>>, vector<8x32xbf16>
    %cst_51 = arith.constant dense<0.000000e+00> : vector<16x32xf32>
    %127 = tpu.matmul %125, %126, %cst_51 {dimension_numbers = #tpu.dot_dimension_numbers<[1], [0], [0], [1], [0, 0, 1, 1], [], []>} : vector<16x8xbf16>, vector<8x32xbf16>, vector<16x32xf32> -> vector<16x32xf32>
    %128 = arith.addf %104, %127 : vector<16x32xf32>
    %129 = arith.addf %0, %128 : vector<16x32xf32>
    %130 = arith.mulf %129, %129 : vector<16x32xf32>
    %cst_52 = arith.constant dense<0.000000e+00> : vector<16xf32>
    %131 = vector.multi_reduction <add>, %130, %cst_52 [1] : vector<16x32xf32> to vector<16xf32>
    %132 = vector.shape_cast %131 : vector<16xf32> to vector<16x1xf32>
    %cst_53 = arith.constant 3.200000e+01 : f32
    %133 = vector.broadcast %cst_53 : f32 to vector<16x1xf32>
    %134 = arith.divf %132, %133 : vector<16x1xf32>
    %cst_54 = arith.constant 9.99999997E-7 : f32
    %135 = vector.broadcast %cst_54 : f32 to vector<16x1xf32>
    %136 = arith.addf %134, %135 : vector<16x1xf32>
    %137 = math.rsqrt %136 : vector<16x1xf32>
    %138 = vector.broadcast %137 : vector<16x1xf32> to vector<16x32xf32>
    %139 = arith.mulf %129, %138 : vector<16x32xf32>
    %c0_55 = arith.constant 0 : index
    %c0_56 = arith.constant 0 : index
    %140 = vector.load %arg6[%c0_55, %c0_56] : memref<1x32xf32, #tpu.memory_space<vmem>>, vector<1x32xf32>
    %141 = vector.broadcast %140 : vector<1x32xf32> to vector<16x32xf32>
    %142 = arith.mulf %139, %141 : vector<16x32xf32>
    %143 = arith.truncf %142 : vector<16x32xf32> to vector<16x32xbf16>
    %c0_57 = arith.constant 0 : index
    %c0_58 = arith.constant 0 : index
    %144 = vector.load %arg3[%c0_57, %c0_58] : memref<32x128xbf16, #tpu.memory_space<vmem>>, vector<32x128xbf16>
    %cst_59 = arith.constant dense<0.000000e+00> : vector<16x128xf32>
    %145 = tpu.matmul %143, %144, %cst_59 {dimension_numbers = #tpu.dot_dimension_numbers<[1], [0], [0], [1], [0, 0, 1, 1], [], []>} : vector<16x32xbf16>, vector<32x128xbf16>, vector<16x128xf32> -> vector<16x128xf32>
    %146 = vector.extract_strided_slice %145 {offsets = [0, 0], sizes = [16, 64], strides = [1, 1]} : vector<16x128xf32> to vector<16x64xf32>
    %147 = vector.extract_strided_slice %145 {offsets = [0, 64], sizes = [16, 64], strides = [1, 1]} : vector<16x128xf32> to vector<16x64xf32>
    %148 = arith.negf %146 : vector<16x64xf32>
    %149 = math.exp %148 : vector<16x64xf32>
    %cst_60 = arith.constant 1.000000e+00 : f32
    %150 = vector.broadcast %cst_60 : f32 to vector<16x64xf32>
    %151 = arith.addf %150, %149 : vector<16x64xf32>
    %152 = arith.divf %150, %151 : vector<16x64xf32>
    %153 = arith.mulf %146, %152 : vector<16x64xf32>
    %154 = arith.mulf %153, %147 : vector<16x64xf32>
    %155 = arith.truncf %154 : vector<16x64xf32> to vector<16x64xbf16>
    %c0_61 = arith.constant 0 : index
    %c0_62 = arith.constant 0 : index
    %156 = vector.load %arg4[%c0_61, %c0_62] : memref<64x32xbf16, #tpu.memory_space<vmem>>, vector<64x32xbf16>
    %cst_63 = arith.constant dense<0.000000e+00> : vector<16x32xf32>
    %157 = tpu.matmul %155, %156, %cst_63 {dimension_numbers = #tpu.dot_dimension_numbers<[1], [0], [0], [1], [0, 0, 1, 1], [], []>} : vector<16x64xbf16>, vector<64x32xbf16>, vector<16x32xf32> -> vector<16x32xf32>
    %158 = arith.addf %129, %157 : vector<16x32xf32>
    %c0_64 = arith.constant 0 : index
    %c0_65 = arith.constant 0 : index
    %159 = vector.load %arg11[%c0_64, %c0_65] : memref<16x32xf32, #tpu.memory_space<vmem>>, vector<16x32xf32>
    tpu.vector_store %arg11[%c0_64, %c0_65], %158 {strides = array<i32>} : memref<16x32xf32, #tpu.memory_space<vmem>>, vector<16x32xf32>,
    return
  }
}

</mosaic_0001>

<bundles_post_ra>
// kernel: tpu_custom_call.1
= control target key start
LH: loop header
LB: loop body
LE: loop exit
PB: predicated region body
PF: predicated region fallthrough
CT: control target
= control target key end

     0   :  { %16 = vsyncpa [#allocation3], 0  ;;  %s2514_s0 = inlined_call_operand.vmem [shape: f32[16,32], index: 0, kind: input, shape index: {}]   ;;  %s2515_s1 = inlined_call_operand.hbm [shape: bf16[32,96], index: 1, kind: input, shape index: {}]   ;;  %s2516_s2 = inlined_call_operand.hbm [shape: bf16[32,32], index: 2, kind: input, shape index: {}]   ;;  %s2517_s3 = inlined_call_operand.hbm [shape: bf16[32,128], index: 3, kind: input, shape index: {}]   ;;  %s2518_s4 = inlined_call_operand.vmem [shape: bf16[64,32], index: 4, kind: input, shape index: {}]   ;;  %s2519_s5 = inlined_call_operand.hbm [shape: f32[1,32], index: 5, kind: input, shape index: {}]   ;;  %s2520_s6 = inlined_call_operand.hbm [shape: f32[1,32], index: 6, kind: input, shape index: {}]   ;;  %s2521_s7 = inlined_call_operand.vmem [shape: f32[32,32], index: 7, kind: input, shape index: {}]   ;;  %s2522_s8 = inlined_call_operand.hbm [shape: f32[16,32], index: 8, kind: input, shape index: {}]   ;;  %s2523_s9 = inlined_call_operand.vmem [shape: f32[16,32], index: 9, kind: input, shape index: {}]   ;;  %s2524_s10 = inlined_call_operand.hbm [shape: f32[16,16], index: 10, kind: input, shape index: {}]   ;;  %s2525_s11 = inlined_call_operand.hbm [shape: f32[16,32], index: 11, kind: output, shape index: {}]  }
   0x1   :  { %17 = vsyncpa [#allocation6], 0 }
   0x2   :  { %18 = vsyncpa [#allocation9], 0 }
   0x3   :  { %19 = vsyncpa [#allocation12], 0 }
   0x4   :  { %20 = vsyncpa [#allocation4], 0  ;;  %s2155_s17 = smov [#allocation5]   ;;  %s2156_s19 = smov [#allocation8]  }
   0x5   :  { %s40_s18 = sshll.u32 %s2155_s17, 4  ;;  %s67_s20 = sshll.u32 %s2156_s19, 4  ;;  %s41_s18 = int_to_ptr.vmem [resolvable:$true] %s40_s18  ;;  %s68_s20 = int_to_ptr.vmem [resolvable:$true] %s67_s20 }
   0x6   :  { %s1993_s21 = scalar_lea.vmem %s41_s18, 256  ;;  %p1998_p1 = scmp.lt.s32.totalorder %s41_s18, %s41_s18 }
   0x7   :  { %p1994_p0 = scmp.ne.s32.totalorder %s41_s18, %s1993_s21  ;;  %p1999_p2 = scmp.lt.s32.totalorder %s1993_s21, %s1993_s21 }
   0x9   :  { %p2000_p3 = por %p1999_p2, %p1998_p1 }
   0xb   :  { %p2001_p4 = pnand %p2000_p3, %p1994_p0 }
   0xd   :  { %2004 = shalt.err (!%p2001_p4)
}
   0xe   :  { %s2157_s22 = smov 64   ;;  %s2158_s23 = smov 4  }
   0xf   :  { %46 = dma.hbm_to_vmem [thread:$0]  %s2516_s2, 256, %s41_s18, [#allocation6], %s2157_s22, %s2157_s22, %s2158_s23  }
  0x10   :  { %s2013_s26 = scalar_lea.vmem %s68_s20, 16  ;;  %s2017_s27 = scalar_lea.vmem %s68_s20, 32 }
  0x11   :  { %p2014_p5 = scmp.ne.s32.totalorder %s68_s20, %s2013_s26  ;;  %p2018_p6 = scmp.lt.s32.totalorder %s68_s20, %s68_s20 }
  0x12   :  { %p2019_p7 = scmp.lt.s32.totalorder %s2017_s27, %s2013_s26 }
  0x14   :  { %p2020_p8 = por %p2019_p7, %p2018_p6 }
  0x16   :  { %p2021_p9 = pnand %p2020_p8, %p2014_p5 }
  0x18   :  { %2024 = shalt.err (!%p2021_p9)
}
  0x19   :  { %70 = dma.hbm_to_vmem [thread:$0]  %s2519_s5, 16, %s68_s20, [#allocation9]  }
  0x1a   :  { %s2159_s30 = smov [#allocation11]  }
  0x1b   :  { %s88_s12 = sshll.u32 %s2159_s30, 4  ;;  %s89_s12 = int_to_ptr.vmem [resolvable:$true] %s88_s12 }
  0x1c   :  { %s2033_s13 = scalar_lea.vmem %s89_s12, 256  ;;  %p2038_p11 = scmp.lt.s32.totalorder %s89_s12, %s89_s12 }
  0x1d   :  { %p2034_p10 = scmp.ne.s32.totalorder %s89_s12, %s2033_s13  ;;  %p2039_p12 = scmp.lt.s32.totalorder %s2033_s13, %s2033_s13 }
  0x1f   :  { %p2040_p13 = por %p2039_p12, %p2038_p11 }
  0x21   :  { %p2041_p0 = pnand %p2040_p13, %p2034_p10 }
  0x23   :  { %2044 = shalt.err (!%p2041_p0)
}
  0x24   :  { %s2160_s2 = smov 128   ;;  %s2161_s14 = smov 8  }
  0x25   :  { %94 = dma.hbm_to_vmem [thread:$0]  %s2522_s8, 256, %s89_s12, [#allocation12], %s2160_s2, %s2160_s2, %s2161_s14  }
  0x26   :  { %s2162_s5 = smov [#allocation2]   ;;  %s2163_s18 = smov [#allocation7]  }
  0x27   :  { %s28_s17 = sshll.u32 %s2162_s5, 4  ;;  %s52_s19 = sshll.u32 %s2163_s18, 4  ;;  %s29_s17 = int_to_ptr.vmem [resolvable:$true] %s28_s17  ;;  %s53_s19 = int_to_ptr.vmem [resolvable:$true] %s52_s19 }
  0x28   :  { %s2053_s20 = scalar_lea.vmem %s29_s17, 256  ;;  %p2058_p2 = scmp.lt.s32.totalorder %s29_s17, %s29_s17 }
  0x29   :  { %p2054_p1 = scmp.ne.s32.totalorder %s29_s17, %s2053_s20  ;;  %p2059_p3 = scmp.lt.s32.totalorder %s2053_s20, %s2053_s20 }
  0x2b   :  { %p2060_p4 = por %p2059_p3, %p2058_p2 }
  0x2d   :  { %p2061_p5 = pnand %p2060_p4, %p2054_p1 }
  0x2f   :  { %2064 = shalt.err (!%p2061_p5)
}
  0x30   :  { %34 = dma.hbm_to_vmem [thread:$0]  %s2515_s1, 256, %s29_s17, [#allocation3], %s2157_s22, %s2157_s22, %s2158_s23  }
  0x31   :  { %s2073_s8 = scalar_lea.vmem %s53_s19, 256  ;;  %p2078_p7 = scmp.lt.s32.totalorder %s53_s19, %s53_s19 }
  0x32   :  { %p2074_p6 = scmp.ne.s32.totalorder %s53_s19, %s2073_s8  ;;  %p2079_p8 = scmp.lt.s32.totalorder %s2073_s8, %s2073_s8 }
  0x34   :  { %p2080_p9 = por %p2079_p8, %p2078_p7 }
  0x36   :  { %p2081_p10 = pnand %p2080_p9, %p2074_p6 }
  0x38   :  { %2084 = shalt.err (!%p2081_p10)
}
  0x39   :  { %58 = dma.hbm_to_vmem [thread:$0]  %s2517_s3, 256, %s53_s19, [#allocation6], %s2157_s22, %s2157_s22, %s2158_s23  }
  0x3a   :  { %s2164_s27 = smov [#allocation10]   ;;  %s2165_s29 = smov [#allocation13]  }
  0x3b   :  { %s77_s28 = sshll.u32 %s2164_s27, 4  ;;  %s102_s1 = sshll.u32 %s2165_s29, 4  ;;  %s78_s28 = int_to_ptr.vmem [resolvable:$true] %s77_s28  ;;  %s103_s1 = int_to_ptr.vmem [resolvable:$true] %s102_s1 }
  0x3c   :  { %s2093_s30 = scalar_lea.vmem %s78_s28, 16  ;;  %s2097_s12 = scalar_lea.vmem %s78_s28, 32 }
  0x3d   :  { %p2094_p11 = scmp.ne.s32.totalorder %s78_s28, %s2093_s30  ;;  %p2098_p12 = scmp.lt.s32.totalorder %s78_s28, %s78_s28 }
  0x3e   :  { %p2099_p13 = scmp.lt.s32.totalorder %s2097_s12, %s2093_s30 }
  0x40   :  { %p2100_p0 = por %p2099_p13, %p2098_p12 }
  0x42   :  { %p2101_p1 = pnand %p2100_p0, %p2094_p11 }
  0x44   :  { %2104 = shalt.err (!%p2101_p1)
}
  0x45   :  { %80 = dma.hbm_to_vmem [thread:$0]  %s2520_s6, 16, %s78_s28, [#allocation9]  }
  0x46   :  { %s2113_s16 = scalar_lea.vmem %s103_s1, 256  ;;  %p2118_p3 = scmp.lt.s32.totalorder %s103_s1, %s103_s1 }
  0x47   :  { %p2114_p2 = scmp.ne.s32.totalorder %s103_s1, %s2113_s16  ;;  %p2119_p4 = scmp.lt.s32.totalorder %s2113_s16, %s2113_s16 }
  0x49   :  { %p2120_p5 = por %p2119_p4, %p2118_p3 }
  0x4b   :  { %p2121_p6 = pnand %p2120_p5, %p2114_p2 }
  0x4d   :  { %2124 = shalt.err (!%p2121_p6)
}
  0x4e   :  { %108 = dma.hbm_to_vmem [thread:$0]  %s2524_s10, 256, %s103_s1, [#allocation12], %s2160_s2, %s2160_s2, %s2161_s14  }
  0x4f   :  { %2145 = dma.done.wait [#allocation3], 256  }
  0x50   :  { %2146 = vsyncadd [#allocation3], 4294967040 }
  0x51   :  { %2147 = dma.done.wait [#allocation6], 512  }
  0x52   :  { %2148 = vsyncadd [#allocation6], 4294966784 }
  0x53   :  { %2149 = dma.done.wait [#allocation9], 32  }
  0x54   :  { %2150 = vsyncadd [#allocation9], 4294967264 }
  0x55   :  { %2151 = dma.done.wait [#allocation12], 512  }
  0x56   :  { %2152 = vsyncadd [#allocation12], 4294966784  ;;  %v2279_v0 = vld [vmem:[%s2514_s0] sm:$0xff]  ;;  %vm145_vm0 = vcmask 261120   ;;  %v2284_v1 = vld [vmem:[%s2514_s0 + $0x8] sm:$0xff]  ;;  %v2166_v7 = vmov 0.0  }
  0x57   :  { %v143_v2 = vmul.f32 %v2279_v0, %v2279_v0  ;;  %v144_v3 = vmul.f32 %v2284_v1, %v2284_v1  ;;  %v1929_v6 = vld [vmem:[#allocation2 + $0x8] sm:$0xff]   ;;  %1774 = vmatprep.subr.bf16.mxu0 %v2166_v7  ;;  %vm2167_vm1 = vmmov 0   ;;  %v1930_v8 = vld [vmem:[#allocation2] sm:$0xff]   ;;  %v142_v10 = vld [vmem:[%s2521_s7 + $0x18] sm:$0xff]  ;;  %s2168_s21 = smov 32   ;;  %s2169_s27 = smov 96  }
  0x58   :  { %1778 = vmatprep.mubr.msk.bf16.mxu0 %vm2167_vm1, %v2166_v7  ;;  %1775 = vmatpush3.bf16.msra.mxu0 %v1929_v6  ;;  %v2296_v9 = vld [vmem:[#allocation11 + $0x8] sm:$0xff]  ;;  %v141_v11 = vld [vmem:[%s2521_s7 + $0x10] sm:$0xff]  ;;  %v140_v26 = vld [vmem:[%s2521_s7 + $0x8] sm:$0xff]  ;;  %vm429_vm2 = vcmask 64512   ;;  %s2171_s30 = smov 120   ;;  %vm521_vm3 = vcmask 130048  }
  0x59   :  { %v146_v4 = vsel %vm145_vm0, %v143_v2, 0.0  ;;  %v149_v5 = vsel %vm145_vm0, %v144_v3, 0.0  ;;  %1776 = vmatprep.subr.bf16.mxu0 %v2166_v7  ;;  %1782 = vmatprep.subr.mxu1 %v142_v10  ;;  %v1664_v21 = vld [vmem:[#allocation8] ss:$0 sm:$0xff]  ;;  %v139_v27 = vld [vmem:[%s2521_s7] sm:$0xff]  ;;  %v133_v32 = vld [vmem:[#allocation11] sm:$0xff] }
  0x5a   :  { %147 = vadd.xlane.f32.xlu0 %v146_v4  ;;  %1783 = vmatpush3.msra.mxu1 %v142_v10  ;;  %v135_v36 = vld [vmem:[%s2523_s9] sm:$0xff]  ;;  %v136_v41 = vld [vmem:[%s2523_s9 + $0x8] sm:$0xff]  ;;  %s2170_s9 = smov 88   ;;  %s2172_s12 = smov 56   ;;  %vm844_vm4 = vcmask 1043456   ;;  %vm1595_vm5 = vcmask 523264  }
  0x5b   :  { %1784 = vmatprep.subr.mxu1 %v141_v11  ;;  %v2376_v63 = vld [vmem:[#allocation13 + $0x8] sm:$0xff]  ;;  %v2378_v4 = vld [vmem:[#allocation13] sm:$0xff]  ;;  %s2173_s13 = smov 80   ;;  %s2174_s15 = smov 112  }
  0x5c   :  { %1777 = vmatpush3.bf16.msra.mxu0 %v1930_v8  ;;  %1785 = vmatpush3.msra.mxu1 %v141_v11  ;;  %s2175_s16 = smov 72   ;;  %s2176_s3 = smov 104  }
  0x5d   :  { %1793 = vmatprep.subr.mxu0 %v142_v10  ;;  %1786 = vmatprep.subr.mxu1 %v140_v26  ;;  %s2177_s23 = smov 48   ;;  %s2178_s6 = smov 40  }
  0x5e   :  { %150 = vadd.xlane.f32.xlu0 %v149_v5  ;;  %1787 = vmatpush3.msra.mxu1 %v140_v26 }
  0x5f   :  { %1788 = vmatprep.subr.mxu1 %v139_v27 }
  0x60   :  { %1789 = vmatpush3.msra.mxu1 %v139_v27 }
  0x74   :  { %322 = vrot.lane.b32.xlu0 %v2296_v9, %s2168_s21 }
  0xe3   :  { %v148_v12 = vpop.xlane.xlu0 %147 }
  0xe4   :  { %v153_v13 = vmul.f32 0.03125, %v148_v12 }
  0xe6   :  { %v155_v14 = vadd.f32 1e-06, %v153_v13 }
  0xe7   :  { %v151_v15 = vpop.xlane.xlu0 %150 }
  0xe8   :  { %1937 = vrsqrt.f32 %v155_v14  ;;  %v154_v16 = vmul.f32 0.03125, %v151_v15 }
  0xea   :  { %v156_v17 = vadd.f32 1e-06, %v154_v16 }
  0xeb   :  { %v323_v46 = vpop.permute.xlu0 %322 }
  0xec   :  { %1939 = vrsqrt.f32 %v156_v17 }
  0xf5   :  { %v1938_v18 = vpop.eup %1937 }
  0xf6   :  { %v159_v19 = vmul.f32 %v1938_v18, %v2279_v0 }
  0xf8   :  { %v168_v23 = vmul.f32 %v1664_v21, %v159_v19 }
  0xf9   :  { %v1940_v20 = vpop.eup %1939 }
  0xfa   :  { %v160_v22 = vmul.f32 %v1940_v20, %v2284_v1 }
  0xfc   :  { %v169_v24 = vmul.f32 %v1664_v21, %v160_v22 }
  0xfe   :  { %v170_v25 = vpack.c.bf16 %v169_v24, %v168_v23 }
 0x100   :  { %1779 = vmatmul.mubr.msk.bf16.vlgmr.msra.gmra.mxu0 %vm145_vm0, %v170_v25 }
 0x101   :  { %1794 = vmatpush3.msra.mxu0 %v142_v10 }
 0x102   :  { %1795 = vmatprep.subr.mxu0 %v141_v11 }
 0x103   :  { %1796 = vmatpush3.msra.mxu0 %v141_v11 }
 0x104   :  { %1797 = vmatprep.subr.mxu0 %v140_v26 }
 0x105   :  { %1798 = vmatpush3.msra.mxu0 %v140_v26 }
 0x106   :  { %1799 = vmatprep.subr.mxu0 %v139_v27 }
 0x107   :  { %1800 = vmatpush3.msra.mxu0 %v139_v27 }
 0x1c0   :  { %v2315_v28 = vpop.f32.mrf.mxu0 }
 0x1c1   :  { %328 = vrot.lane.b32.xlu1 %v2315_v28, %s2169_s27  ;;  %1790 = vmatprep.mubr.msk.f32.mxu1 %vm145_vm0, %v2315_v28  ;;  %v231_v38 = vmul.f32 %v2315_v28, %v133_v32 }
 0x1c2   :  { %v1780_v29 = vpop.f32.mrf.mxu0 }
 0x1c4   :  { %v2321_v30 = vpop.f32.mrf.mxu0 }
 0x1c5   :  { %330 = vrot.lane.b32.xlu1 %v2321_v30, %s2169_s27  ;;  %1791 = vmatmul.mubr.msk.f32.vlgmr.msra.gmra.mxu1 %vm145_vm0, %v2321_v30  ;;  %v327_v48 = vmul.f32 %v323_v46, %v2321_v30  ;;  %v232_v55 = vmul.f32 %v2321_v30, %v2296_v9 }
 0x1c6   :  { %v1781_v31 = vpop.f32.mrf.mxu0 }
 0x1c9   :  { %320 = vrot.lane.b32.xlu1 %v133_v32, %s2168_s21 }
 0x233   :  { %v329_v33 = vpop.permute.xlu1 %328 }
 0x234   :  { %1801 = vmatprep.mubr.msk.f32.mxu0 %vm145_vm0, %v329_v33 }
 0x237   :  { %v331_v34 = vpop.permute.xlu1 %330 }
 0x238   :  { %1802 = vmatmul.mubr.msk.f32.vlgmr.msra.gmra.mxu0 %vm145_vm0, %v331_v34 }
 0x23b   :  { %v321_v47 = vpop.permute.xlu1 %320 }
 0x23c   :  { %v326_v51 = vmul.f32 %v321_v47, %v2315_v28 }
 0x285   :  { %v1792_v35 = vpop.f32.mrf.mxu1 }
 0x286   :  { %v315_v53 = vmul.f32 %v1792_v35, %v136_v41 }
 0x287   :  { %v305_v37 = vpop.f32.mrf.mxu1 }
 0x288   :  { %v314_v39 = vmul.f32 %v305_v37, %v135_v36  ;;  %v2356_v56 = vadd.f32 %v315_v53, %v232_v55 }
 0x28a   :  { %v2334_v40 = vadd.f32 %v314_v39, %v231_v38 }
 0x28c   :  { %1808 = vmatprep.mubr.msk.f32.mxu1 %vm429_vm2, %v2334_v40 }
 0x2f8   :  { %v1803_v42 = vpop.f32.mrf.mxu0 }
 0x2f9   :  { %v412_v43 = vmul.f32 %v1803_v42, %v136_v41 }
 0x2fa   :  { %v402_v44 = vpop.f32.mrf.mxu0 }
 0x2fb   :  { %417 = vrot.lane.b32.xlu1 %v412_v43, %s2168_s21  ;;  %v411_v45 = vmul.f32 %v402_v44, %v135_v36 }
 0x2ff   :  { %415 = vrot.lane.b32.xlu1 %v411_v45, %s2168_s21 }
 0x36d   :  { %v418_v49 = vpop.permute.xlu1 %417 }
 0x36e   :  { %v2344_v50 = vadd.f32 %v418_v49, %v327_v48  ;;  %v632_v49 = vld [vmem:[#allocation5] sm:$0xf] }
 0x370   :  { %427 = vrot.lane.b32.xlu1 %v2344_v50, %s2169_s27 }
 0x371   :  { %v416_v52 = vpop.permute.xlu1 %415 }
 0x372   :  { %v2349_v54 = vadd.f32 %v416_v52, %v326_v51  ;;  %v893_v51 = vsel %vm844_vm4, %v632_v49, 0 }
 0x374   :  { %637 = vrot.lane.b32.xlu0 %v2349_v54, %s2170_s9  ;;  %425 = vrot.lane.b32.xlu1 %v2349_v54, %s2169_s27 }
 0x378   :  { %635 = vrot.lane.b32.xlu0 %v2356_v56, %s2171_s30  ;;  %639 = vrot.lane.b32.xlu1 %v2344_v50, %s2170_s9 }
 0x37c   :  { %633 = vrot.lane.b32.xlu1 %v2334_v40, %s2171_s30 }
 0x3e2   :  { %v428_v57 = vpop.permute.xlu1 %427 }
 0x3e3   :  { %1804 = vmatprep.subr.msk.mxu1 %vm429_vm2, %v428_v57 }
 0x3e4   :  { %1805 = vmatpush3.xpose.msk.msra.mxu1 %vm429_vm2, %v428_v57 }
 0x3e6   :  { %v426_v58 = vpop.permute.xlu1 %425  ;;  %v638_v60 = vpop.permute.xlu0 %637 }
 0x3e7   :  { %1806 = vmatprep.subr.msk.mxu1 %vm429_vm2, %v426_v58 }
 0x3e8   :  { %1807 = vmatpush3.xpose.msk.msra.mxu1 %vm429_vm2, %v426_v58 }
 0x3ea   :  { %v640_v59 = vpop.permute.xlu1 %639  ;;  %v636_v62 = vpop.permute.xlu0 %635 }
 0x3eb   :  { %1809 = vmatmul.mubr.msk.f32.vlgmr.msra.gmra.mxu1 %vm429_vm2, %v2356_v56  ;;  %1818 = vmatprep.subr.msk.mxu1 %vm429_vm2, %v640_v59 }
 0x3ec   :  { %1819 = vmatpush3.xpose.msk.msra.mxu1 %vm429_vm2, %v640_v59 }
 0x3ed   :  { %1820 = vmatprep.subr.msk.mxu1 %vm429_vm2, %v638_v60 }
 0x3ee   :  { %v634_v61 = vpop.permute.xlu1 %633 }
 0x3ef   :  { %1822 = vmatprep.mubr.msk.f32.mxu1 %vm429_vm2, %v634_v61 }
 0x3f0   :  { %1821 = vmatpush3.xpose.msk.msra.mxu1 %vm429_vm2, %v638_v60 }
 0x3f1   :  { %1838 = vmatprep.subr.bf16.mxu1 %v2166_v7 }
 0x3f3   :  { %1823 = vmatmul.mubr.msk.f32.vlgmr.msra.gmra.mxu1 %vm429_vm2, %v636_v62 }
 0x3f4   :  { %1840 = vmatprep.mubr.msk.bf16.mxu1 %vm2167_vm1, %v2166_v7  ;;  %1839 = vmatpush3.bf16.msra.mxu1 %v893_v51 }
 0x4ab   :  { %v1810_v2 = vpop.f32.mrf.mxu1 }
 0x4ac   :  { %v516_v3 = vmul.f32 0.35355338, %v1810_v2  ;;  %v840_v2 = vld [vmem:[#allocation5 + $0x4] sm:$0xf] }
 0x4ad   :  { %v506_v5 = vpop.f32.mrf.mxu1 }
 0x4ae   :  { %v518_v6 = vadd.f32 %v516_v3, %v2376_v63  ;;  %v515_v8 = vmul.f32 0.35355338, %v506_v5 }
 0x4b0   :  { %v517_v9 = vadd.f32 %v515_v8, %v2378_v4  ;;  %v520_v10 = vmax.f32 %v518_v6, -3.4028235e+38 }
 0x4b2   :  { %v525_v11 = vsel %vm521_vm3, %v520_v10, -inf  ;;  %v519_v12 = vmax.f32 %v517_v9, -3.4028235e+38  ;;  %v846_v9 = vsel %vm844_vm4, %v840_v2, 0 }
 0x4b3   :  { %526 = vmax.xlane.f32.xlu0 %v525_v11  ;;  %v1824_v13 = vpop.f32.mrf.mxu1 }
 0x4b4   :  { %v725_v14 = vmul.f32 0.35355338, %v1824_v13  ;;  %v522_v15 = vsel %vm521_vm3, %v519_v12, -inf }
 0x4b5   :  { %523 = vmax.xlane.f32.xlu1 %v522_v15  ;;  %v715_v16 = vpop.f32.mrf.mxu1 }
 0x4b6   :  { %v727_v17 = vadd.f32 %v725_v14, %v2376_v63  ;;  %v724_v18 = vmul.f32 0.35355338, %v715_v16 }
 0x4b8   :  { %v726_v19 = vadd.f32 %v724_v18, %v2378_v4  ;;  %v729_v20 = vmax.f32 %v727_v17, -3.4028235e+38 }
 0x4ba   :  { %v733_v21 = vsel %vm521_vm3, %v729_v20, -inf  ;;  %v728_v22 = vmax.f32 %v726_v19, -3.4028235e+38 }
 0x4bb   :  { %734 = vmax.xlane.f32.xlu1 %v733_v21 }
 0x4bc   :  { %v730_v23 = vsel %vm521_vm3, %v728_v22, -inf }
 0x4bd   :  { %731 = vmax.xlane.f32.xlu0 %v730_v23 }
 0x4cc   :  { %544 = vrot.lane.b32.xlu1 %v2315_v28, %s2157_s22 }
 0x4d3   :  { %546 = vrot.lane.b32.xlu0 %v2321_v30, %s2157_s22 }
 0x53c   :  { %v527_v24 = vpop.xlane.xlu0 %526 }
 0x53d   :  { %v529_v25 = vsub.f32 %v520_v10, %v527_v24 }
 0x53e   :  { %v524_v26 = vpop.xlane.xlu1 %523 }
 0x53f   :  { %v532_v27 = vmul.f32 1.442695, %v529_v25  ;;  %v528_v29 = vsub.f32 %v519_v12, %v524_v26 }
 0x541   :  { %1941 = vpow2.f32 %v532_v27  ;;  %v530_v31 = vmul.f32 1.442695, %v528_v29 }
 0x543   :  { %1943 = vpow2.f32 %v530_v31 }
 0x544   :  { %v735_v32 = vpop.xlane.xlu1 %734 }
 0x545   :  { %v737_v33 = vsub.f32 %v729_v20, %v735_v32 }
 0x546   :  { %v732_v34 = vpop.xlane.xlu0 %731 }
 0x547   :  { %v740_v35 = vmul.f32 1.442695, %v737_v33  ;;  %v736_v36 = vsub.f32 %v728_v22, %v732_v34 }
 0x548   :  { %v545_v39 = vpop.permute.xlu1 %544 }
 0x549   :  { %1945 = vpow2.f32 %v740_v35  ;;  %v738_v37 = vmul.f32 1.442695, %v736_v36 }
 0x54a   :  { %v547_v38 = vpop.permute.xlu0 %546 }
 0x54b   :  { %1947 = vpow2.f32 %v738_v37  ;;  %1811 = vmatprep.subr.mxu0 %v547_v38 }
 0x54c   :  { %1812 = vmatpush3.msra.mxu0 %v547_v38 }
 0x54d   :  { %1813 = vmatprep.subr.mxu0 %v545_v39 }
 0x54e   :  { %v1942_v41 = vpop.eup %1941  ;;  %1814 = vmatpush3.msra.mxu0 %v545_v39 }
 0x54f   :  { %v537_v42 = vsel %vm521_vm3, %v1942_v41, 0.0 }
 0x550   :  { %v1944_v43 = vpop.eup %1943  ;;  %538 = vadd.xlane.f32.xlu1 %v537_v42 }
 0x551   :  { %v534_v44 = vsel %vm521_vm3, %v1944_v43, 0.0 }
 0x552   :  { %535 = vadd.xlane.f32.xlu0 %v534_v44 }
 0x556   :  { %v1946_v45 = vpop.eup %1945 }
 0x557   :  { %v745_v46 = vsel %vm521_vm3, %v1946_v45, 0.0 }
 0x558   :  { %v1948_v47 = vpop.eup %1947  ;;  %746 = vadd.xlane.f32.xlu1 %v745_v46 }
 0x559   :  { %v742_v48 = vsel %vm521_vm3, %v1948_v47, 0.0 }
 0x55a   :  { %743 = vadd.xlane.f32.xlu0 %v742_v48 }
 0x569   :  { %754 = vrot.lane.b32.xlu1 %v2321_v30, %s2172_s12 }
 0x56d   :  { %942 = vrot.lane.b32.xlu1 %v2344_v50, %s2173_s13 }
 0x570   :  { %752 = vrot.lane.b32.xlu0 %v2315_v28, %s2172_s12 }
 0x571   :  { %936 = vrot.lane.b32.xlu1 %v2334_v40, %s2174_s15 }
 0x574   :  { %940 = vrot.lane.b32.xlu0 %v2349_v54, %s2173_s13 }
 0x575   :  { %1199 = vrot.lane.b32.xlu1 %v2344_v50, %s2175_s16 }
 0x578   :  { %938 = vrot.lane.b32.xlu0 %v2356_v56, %s2174_s15 }
 0x579   :  { %1193 = vrot.lane.b32.xlu1 %v2334_v40, %s2176_s3 }
 0x57c   :  { %1197 = vrot.lane.b32.xlu0 %v2349_v54, %s2175_s16 }
 0x580   :  { %1195 = vrot.lane.b32.xlu0 %v2356_v56, %s2176_s3 }
 0x5d9   :  { %v539_v52 = vpop.xlane.xlu1 %538 }
 0x5da   :  { %1949 = vrcp.f32 %v539_v52 }
 0x5db   :  { %v536_v53 = vpop.xlane.xlu0 %535 }
 0x5dc   :  { %1951 = vrcp.f32 %v536_v53 }
 0x5e1   :  { %v747_v55 = vpop.xlane.xlu1 %746 }
 0x5e2   :  { %1953 = vrcp.f32 %v747_v55 }
 0x5e3   :  { %v744_v57 = vpop.xlane.xlu0 %743 }
 0x5e4   :  { %1955 = vrcp.f32 %v744_v57 }
 0x5e5   :  { %v755_v58 = vpop.permute.xlu1 %754 }
 0x5e6   :  { %1825 = vmatprep.subr.mxu0 %v755_v58 }
 0x5e7   :  { %v1950_v50 = vpop.eup %1949  ;;  %v753_v54 = vpop.permute.xlu0 %752 }
 0x5e8   :  { %v543_v62 = vmul.f32 %v1950_v50, %v1942_v41 }
 0x5e9   :  { %v1952_v59 = vpop.eup %1951  ;;  %v943_v60 = vpop.permute.xlu1 %942 }
 0x5ea   :  { %v542_v61 = vmul.f32 %v1952_v59, %v1944_v43 }
 0x5eb   :  { %v941_v10 = vpop.permute.xlu0 %940 }
 0x5ec   :  { %1815 = vmatprep.mubr.msk.f32.mxu0 %vm521_vm3, %v542_v61 }
 0x5ed   :  { %v937_v40 = vpop.permute.xlu1 %936  ;;  %1816 = vmatmul.mubr.msk.f32.vlgmr.msra.gmra.mxu0 %vm521_vm3, %v543_v62 }
 0x5ee   :  { %1826 = vmatpush3.msra.mxu0 %v755_v58 }
 0x5ef   :  { %1827 = vmatprep.subr.mxu0 %v753_v54  ;;  %v1954_v56 = vpop.eup %1953  ;;  %v939_v11 = vpop.permute.xlu0 %938 }
 0x5f0   :  { %1828 = vmatpush3.msra.mxu0 %v753_v54  ;;  %v751_v8 = vmul.f32 %v1954_v56, %v1946_v45 }
 0x5f1   :  { %v1956_v3 = vpop.eup %1955  ;;  %v1200_v5 = vpop.permute.xlu1 %1199  ;;  %1832 = vmatprep.subr.bf16.mxu0 %v2166_v7 }
 0x5f2   :  { %1864 = vmatprep.subr.msk.mxu1 %vm429_vm2, %v1200_v5  ;;  %v750_v6 = vmul.f32 %v1956_v3, %v1948_v47 }
 0x5f3   :  { %v1198_v16 = vpop.permute.xlu0 %1197 }
 0x5f4   :  { %1829 = vmatprep.mubr.msk.f32.mxu0 %vm521_vm3, %v750_v6 }
 0x5f5   :  { %1830 = vmatmul.mubr.msk.f32.vlgmr.msra.gmra.mxu0 %vm521_vm3, %v751_v8  ;;  %v1194_v15 = vpop.permute.xlu1 %1193 }
 0x5f6   :  { %1833 = vmatpush3.bf16.msra.mxu0 %v846_v9  ;;  %1834 = vmatprep.mubr.msk.bf16.mxu0 %vm2167_vm1, %v2166_v7 }
 0x5f7   :  { %1844 = vmatprep.subr.msk.mxu0 %vm429_vm2, %v943_v60  ;;  %v1196_v20 = vpop.permute.xlu0 %1195 }
 0x6ad   :  { %v1817_v12 = vpop.f32.mrf.mxu0 }
 0x6af   :  { %v622_v13 = vpop.f32.mrf.mxu0 }
 0x6b0   :  { %v631_v14 = vpack.c.bf16 %v1817_v12, %v622_v13 }
 0x6b2   :  { %1841 = vmatmul.mubr.msk.bf16.vlgmr.msra.gmra.mxu1 %vm429_vm2, %v631_v14 }
 0x6b3   :  { %1865 = vmatpush3.xpose.msk.msra.mxu1 %vm429_vm2, %v1200_v5  ;;  %1868 = vmatprep.mubr.msk.f32.mxu1 %vm429_vm2, %v1194_v15 }
 0x6b4   :  { %1866 = vmatprep.subr.msk.mxu1 %vm429_vm2, %v1198_v16 }
 0x6b5   :  { %v1831_v17 = vpop.f32.mrf.mxu0 }
 0x6b7   :  { %1867 = vmatpush3.xpose.msk.msra.mxu1 %vm429_vm2, %v1198_v16  ;;  %v830_v18 = vpop.f32.mrf.mxu0 }
 0x6b8   :  { %v839_v19 = vpack.c.bf16 %v1831_v17, %v830_v18  ;;  %1878 = vmatprep.subr.bf16.mxu1 %v2166_v7 }
 0x6ba   :  { %1835 = vmatmul.mubr.msk.bf16.vlgmr.msra.gmra.mxu0 %vm429_vm2, %v839_v19  ;;  %1869 = vmatmul.mubr.msk.f32.vlgmr.msra.gmra.mxu1 %vm429_vm2, %v1196_v20  ;;  %v1143_v20 = vld [vmem:[#allocation5 + $0x8] sm:$0xf] }
 0x6bb   :  { %1845 = vmatpush3.xpose.msk.msra.mxu0 %vm429_vm2, %v943_v60  ;;  %1848 = vmatprep.mubr.msk.f32.mxu0 %vm429_vm2, %v937_v40 }
 0x6bc   :  { %1846 = vmatprep.subr.msk.mxu0 %vm429_vm2, %v941_v10  ;;  %1880 = vmatprep.mubr.msk.bf16.mxu1 %vm2167_vm1, %v2166_v7 }
 0x6bf   :  { %1847 = vmatpush3.xpose.msk.msra.mxu0 %vm429_vm2, %v941_v10 }
 0x6c2   :  { %1849 = vmatmul.mubr.msk.f32.vlgmr.msra.gmra.mxu0 %vm429_vm2, %v939_v11 }
 0x772   :  { %v929_v21 = vpop.f32.mrf.mxu1 }
 0x774   :  { %v1842_v22 = vpop.f32.mrf.mxu1 }
 0x776   :  { %v932_v23 = vpop.f32.mrf.mxu1 }
 0x778   :  { %v1843_v24 = vpop.f32.mrf.mxu1 }
 0x77a   :  { %v882_v25 = vpop.f32.mrf.mxu0  ;;  %v1870_v57 = vpop.f32.mrf.mxu1 }
 0x77b   :  { %v2432_v26 = vadd.f32 %v929_v21, %v882_v25  ;;  %v1285_v59 = vmul.f32 0.35355338, %v1870_v57  ;;  %v1148_v21 = vsel %vm844_vm4, %v1143_v20, 0 }
 0x77c   :  { %v1836_v27 = vpop.f32.mrf.mxu0  ;;  %v1275_v58 = vpop.f32.mrf.mxu1 }
 0x77d   :  { %v1284_v50 = vmul.f32 0.35355338, %v1275_v58  ;;  %v1287_v61 = vadd.f32 %v1285_v59, %v2376_v63  ;;  %v1932_v59 = vld [vmem:[#allocation7] sm:$0xff]  }
 0x77e   :  { %v885_v29 = vpop.f32.mrf.mxu0 }
 0x77f   :  { %v2434_v31 = vadd.f32 %v932_v23, %v885_v29  ;;  %v1286_v60 = vadd.f32 %v1284_v50, %v2378_v4  ;;  %v1289_v40 = vmax.f32 %v1287_v61, -3.4028235e+38 }
 0x780   :  { %v1837_v32 = vpop.f32.mrf.mxu0 }
 0x781   :  { %v1288_v62 = vmax.f32 %v1286_v60, -3.4028235e+38  ;;  %v1293_v56 = vsel %vm521_vm3, %v1289_v40, -inf }
 0x782   :  { %v1850_v33 = vpop.f32.mrf.mxu0 }
 0x783   :  { %v1028_v34 = vmul.f32 0.35355338, %v1850_v33  ;;  %v1290_v54 = vsel %vm521_vm3, %v1288_v62, -inf }
 0x784   :  { %v1018_v35 = vpop.f32.mrf.mxu0 }
 0x785   :  { %v1030_v36 = vadd.f32 %v1028_v34, %v2376_v63  ;;  %v1027_v37 = vmul.f32 0.35355338, %v1018_v35  ;;  %v1400_v35 = vld [vmem:[#allocation5 + $0xc] sm:$0xf] }
 0x787   :  { %v1029_v38 = vadd.f32 %v1027_v37, %v2378_v4  ;;  %v1032_v39 = vmax.f32 %v1030_v36, -3.4028235e+38  ;;  %v1405_v36 = vsel %vm844_vm4, %v1400_v35, 0 }
 0x788   :  { %1879 = vmatpush3.bf16.msra.mxu1 %v1405_v36 }
 0x789   :  { %v1036_v41 = vsel %vm521_vm3, %v1032_v39, -inf  ;;  %v1031_v42 = vmax.f32 %v1029_v38, -3.4028235e+38  ;;  %1892 = vmatprep.subr.bf16.mxu1 %v2166_v7 }
 0x78a   :  { %1037 = vmax.xlane.f32.xlu0 %v1036_v41 }
 0x78b   :  { %v1033_v43 = vsel %vm521_vm3, %v1031_v42, -inf }
 0x78c   :  { %1034 = vmax.xlane.f32.xlu1 %v1033_v43 }
 0x813   :  { %v1038_v44 = vpop.xlane.xlu0 %1037 }
 0x814   :  { %v1040_v45 = vsub.f32 %v1032_v39, %v1038_v44 }
 0x815   :  { %v1035_v46 = vpop.xlane.xlu1 %1034 }
 0x816   :  { %v1043_v47 = vmul.f32 1.442695, %v1040_v45  ;;  %v1039_v48 = vsub.f32 %v1031_v42, %v1035_v46 }
 0x818   :  { %1957 = vpow2.f32 %v1043_v47  ;;  %v1041_v49 = vmul.f32 1.442695, %v1039_v48 }
 0x81a   :  { %1959 = vpow2.f32 %v1041_v49 }
 0x825   :  { %v1958_v51 = vpop.eup %1957 }
 0x826   :  { %v1048_v52 = vsel %vm521_vm3, %v1958_v51, 0.0 }
 0x827   :  { %v1960_v53 = vpop.eup %1959  ;;  %1049 = vadd.xlane.f32.xlu1 %v1048_v52 }
 0x828   :  { %v1045_v55 = vsel %vm521_vm3, %v1960_v53, 0.0 }
 0x829   :  { %1046 = vadd.xlane.f32.xlu0 %v1045_v55 }
 0x838   :  { %1055 = vrot.lane.b32.xlu1 %v2315_v28, %s2177_s23 }
 0x83f   :  { %1057 = vrot.lane.b32.xlu0 %v2321_v30, %s2177_s23 }
 0x85c   :  { %1291 = vmax.xlane.f32.xlu1 %v1290_v54 }
 0x85e   :  { %1294 = vmax.xlane.f32.xlu0 %v1293_v56 }
 0x8b0   :  { %v1050_v2 = vpop.xlane.xlu1 %1049 }
 0x8b1   :  { %1961 = vrcp.f32 %v1050_v2 }
 0x8b2   :  { %v1047_v3 = vpop.xlane.xlu0 %1046 }
 0x8b3   :  { %1963 = vrcp.f32 %v1047_v3 }
 0x8b4   :  { %v1056_v6 = vpop.permute.xlu1 %1055 }
 0x8b6   :  { %v1058_v5 = vpop.permute.xlu0 %1057 }
 0x8b7   :  { %1851 = vmatprep.subr.mxu0 %v1058_v5 }
 0x8b8   :  { %1852 = vmatpush3.msra.mxu0 %v1058_v5  ;;  %v1700_v5 = vld [vmem:[#allocation10] ss:$0 sm:$0xff] }
 0x8b9   :  { %1853 = vmatprep.subr.mxu0 %v1056_v6 }
 0x8ba   :  { %1854 = vmatpush3.msra.mxu0 %v1056_v6 }
 0x8bb   :  { %1858 = vmatprep.subr.bf16.mxu0 %v2166_v7 }
 0x8be   :  { %v1962_v63 = vpop.eup %1961 }
 0x8bf   :  { %v1054_v9 = vmul.f32 %v1962_v63, %v1958_v51 }
 0x8c0   :  { %v1964_v4 = vpop.eup %1963 }
 0x8c1   :  { %v1053_v8 = vmul.f32 %v1964_v4, %v1960_v53 }
 0x8c3   :  { %1855 = vmatprep.mubr.msk.f32.mxu0 %vm521_vm3, %v1053_v8 }
 0x8c4   :  { %1856 = vmatmul.mubr.msk.f32.vlgmr.msra.gmra.mxu0 %vm521_vm3, %v1054_v9  ;;  %v1933_v9 = vld [vmem:[%s2518_s4 + $0x18] sm:$0xff]  }
 0x8c5   :  { %1860 = vmatprep.mubr.msk.bf16.mxu0 %vm2167_vm1, %v2166_v7  ;;  %1859 = vmatpush3.bf16.msra.mxu0 %v1148_v21 }
 0x8e5   :  { %v1292_v10 = vpop.xlane.xlu1 %1291 }
 0x8e6   :  { %v1296_v11 = vsub.f32 %v1288_v62, %v1292_v10  ;;  %v1934_v10 = vld [vmem:[%s2518_s4 + $0x10] sm:$0xff]  }
 0x8e7   :  { %v1295_v12 = vpop.xlane.xlu0 %1294 }
 0x8e8   :  { %v1298_v13 = vmul.f32 1.442695, %v1296_v11  ;;  %v1297_v14 = vsub.f32 %v1289_v40, %v1295_v12  ;;  %v1935_v11 = vld [vmem:[%s2518_s4 + $0x8] sm:$0xff]   ;;  %v1936_v12 = vld [vmem:[%s2518_s4] sm:$0xff]   ;;  %s2179_s4 = smov [#allocation14]  }
 0x8ea   :  { %1965 = vpow2.f32 %v1298_v13  ;;  %v1300_v15 = vmul.f32 1.442695, %v1297_v14 }
 0x8ec   :  { %1967 = vpow2.f32 %v1300_v15 }
 0x8f7   :  { %v1966_v16 = vpop.eup %1965 }
 0x8f8   :  { %v1302_v17 = vsel %vm521_vm3, %v1966_v16, 0.0 }
 0x8f9   :  { %v1968_v18 = vpop.eup %1967  ;;  %1303 = vadd.xlane.f32.xlu0 %v1302_v17 }
 0x8fa   :  { %v1305_v19 = vsel %vm521_vm3, %v1968_v18, 0.0 }
 0x8fb   :  { %1306 = vadd.xlane.f32.xlu1 %v1305_v19 }
 0x90c   :  { %1312 = vrot.lane.b32.xlu1 %v2315_v28, %s2178_s6 }
 0x90f   :  { %1314 = vrot.lane.b32.xlu0 %v2321_v30, %s2178_s6 }
 0x982   :  { %v1304_v22 = vpop.xlane.xlu0 %1303 }
 0x983   :  { %1969 = vrcp.f32 %v1304_v22 }
 0x984   :  { %v1857_v23 = vpop.f32.mrf.mxu0  ;;  %v1307_v24 = vpop.xlane.xlu1 %1306 }
 0x985   :  { %1971 = vrcp.f32 %v1307_v24 }
 0x986   :  { %v1133_v25 = vpop.f32.mrf.mxu0  ;;  %v1315_v27 = vpop.permute.xlu0 %1314 }
 0x987   :  { %v1142_v29 = vpack.c.bf16 %v1857_v23, %v1133_v25  ;;  %1871 = vmatprep.subr.mxu0 %v1315_v27 }
 0x988   :  { %v1313_v32 = vpop.permute.xlu1 %1312 }
 0x989   :  { %1861 = vmatmul.mubr.msk.bf16.vlgmr.msra.gmra.mxu0 %vm429_vm2, %v1142_v29 }
 0x98a   :  { %1872 = vmatpush3.msra.mxu0 %v1315_v27 }
 0x98b   :  { %1873 = vmatprep.subr.mxu0 %v1313_v32 }
 0x98c   :  { %1874 = vmatpush3.msra.mxu0 %v1313_v32 }
 0x98d   :  { %1884 = vmatprep.subr.bf16.mxu0 %v2166_v7 }
 0x990   :  { %v1970_v28 = vpop.eup %1969 }
 0x991   :  { %v1310_v33 = vmul.f32 %v1970_v28, %v1966_v16 }
 0x992   :  { %v1972_v30 = vpop.eup %1971 }
 0x993   :  { %1875 = vmatprep.mubr.msk.f32.mxu0 %vm521_vm3, %v1310_v33  ;;  %v1311_v34 = vmul.f32 %v1972_v30, %v1968_v18 }
 0x995   :  { %1876 = vmatmul.mubr.msk.f32.vlgmr.msra.gmra.mxu0 %vm521_vm3, %v1311_v34 }
 0x996   :  { %1888 = vmatprep.mubr.msk.bf16.mxu0 %vm2167_vm1, %v2166_v7 }
 0xa49   :  { %v1184_v37 = vpop.f32.mrf.mxu0 }
 0xa4a   :  { %v1191_v38 = vadd.f32 %v1184_v37, %v2432_v26 }
 0xa4b   :  { %v1862_v39 = vpop.f32.mrf.mxu0 }
 0xa4d   :  { %v1187_v41 = vpop.f32.mrf.mxu0 }
 0xa4e   :  { %v1192_v42 = vadd.f32 %v1187_v41, %v2434_v31 }
 0xa4f   :  { %v1863_v43 = vpop.f32.mrf.mxu0 }
 0xa55   :  { %v1877_v44 = vpop.f32.mrf.mxu0 }
 0xa57   :  { %v1390_v45 = vpop.f32.mrf.mxu0 }
 0xa58   :  { %v1399_v46 = vpack.c.bf16 %v1877_v44, %v1390_v45 }
 0xa5a   :  { %1881 = vmatmul.mubr.msk.bf16.vlgmr.msra.gmra.mxu1 %vm429_vm2, %v1399_v46 }
 0xa5b   :  { %1900 = vmatprep.mubr.msk.bf16.mxu1 %vm2167_vm1, %v2166_v7  ;;  %1893 = vmatpush3.bf16.msra.mxu1 %v1933_v9 }
 0xa5c   :  { %1894 = vmatprep.subr.bf16.mxu1 %v2166_v7 }
 0xa5f   :  { %1895 = vmatpush3.bf16.msra.mxu1 %v1934_v10 }
 0xa60   :  { %1896 = vmatprep.subr.bf16.mxu1 %v2166_v7 }
 0xa63   :  { %1897 = vmatpush3.bf16.msra.mxu1 %v1935_v11 }
 0xa64   :  { %1898 = vmatprep.subr.bf16.mxu1 %v2166_v7 }
 0xa67   :  { %1899 = vmatpush3.bf16.msra.mxu1 %v1936_v12 }
 0xb1a   :  { %v1441_v47 = vpop.f32.mrf.mxu1 }
 0xb1b   :  { %v1448_v48 = vadd.f32 %v1441_v47, %v1191_v38 }
 0xb1c   :  { %v1882_v49 = vpop.f32.mrf.mxu1 }
 0xb1d   :  { %v2472_v51 = vadd.f32 %v1448_v48, %v2279_v0  ;;  %v1931_v0 = vld [vmem:[#allocation7 + $0x8] sm:$0xff]  }
 0xb1e   :  { %v1444_v26 = vpop.f32.mrf.mxu1  ;;  %1885 = vmatpush3.bf16.msra.mxu0 %v1931_v0 }
 0xb1f   :  { %v1449_v52 = vadd.f32 %v1444_v26, %v1192_v42  ;;  %v1452_v31 = vmul.f32 %v2472_v51, %v2472_v51  ;;  %1886 = vmatprep.subr.bf16.mxu0 %v2166_v7 }
 0xb20   :  { %v1883_v53 = vpop.f32.mrf.mxu1 }
 0xb21   :  { %v2477_v55 = vadd.f32 %v1449_v52, %v2284_v1  ;;  %v1454_v57 = vsel %vm145_vm0, %v1452_v31, 0.0 }
 0xb22   :  { %1455 = vadd.xlane.f32.xlu1 %v1454_v57  ;;  %1887 = vmatpush3.bf16.msra.mxu0 %v1932_v59 }
 0xb23   :  { %v1453_v58 = vmul.f32 %v2477_v55, %v2477_v55 }
 0xb25   :  { %v1457_v50 = vsel %vm145_vm0, %v1453_v58, 0.0 }
 0xb26   :  { %1458 = vadd.xlane.f32.xlu0 %v1457_v50 }
 0xbab   :  { %v1456_v60 = vpop.xlane.xlu1 %1455 }
 0xbac   :  { %v1460_v61 = vmul.f32 0.03125, %v1456_v60 }
 0xbae   :  { %v1462_v62 = vadd.f32 1e-06, %v1460_v61 }
 0xbaf   :  { %v1459_v1 = vpop.xlane.xlu0 %1458 }
 0xbb0   :  { %1973 = vrsqrt.f32 %v1462_v62  ;;  %v1461_v40 = vmul.f32 0.03125, %v1459_v1 }
 0xbb2   :  { %v1463_v54 = vadd.f32 1e-06, %v1461_v40 }
 0xbb4   :  { %1975 = vrsqrt.f32 %v1463_v54 }
 0xbbd   :  { %v1974_v56 = vpop.eup %1973 }
 0xbbe   :  { %v1466_v2 = vmul.f32 %v1974_v56, %v2472_v51 }
 0xbc0   :  { %v1475_v63 = vmul.f32 %v1700_v5, %v1466_v2 }
 0xbc1   :  { %v1976_v3 = vpop.eup %1975 }
 0xbc2   :  { %v1467_v6 = vmul.f32 %v1976_v3, %v2477_v55 }
 0xbc4   :  { %v1476_v4 = vmul.f32 %v1700_v5, %v1467_v6 }
 0xbc6   :  { %v1477_v8 = vpack.c.bf16 %v1476_v4, %v1475_v63 }
 0xbc8   :  { %1889 = vmatmul.mubr.msk.bf16.vlgmr.msra.gmra.mxu0 %vm145_vm0, %v1477_v8 }
 0xc88   :  { %v1531_v13 = vpop.f32.mrf.mxu0 }
 0xc89   :  { %1554 = vrot.lane.b32.xlu0 %v1531_v13, %s2157_s22  ;;  %v1704_v17 = vmul.f32 -1.442695, %v1531_v13 }
 0xc8a   :  { %v1890_v14 = vpop.f32.mrf.mxu0 }
 0xc8b   :  { %1977 = vpow2.f32 %v1704_v17 }
 0xc8c   :  { %v1534_v15 = vpop.f32.mrf.mxu0 }
 0xc8d   :  { %1556 = vrot.lane.b32.xlu1 %v1534_v15, %s2157_s22  ;;  %v1705_v18 = vmul.f32 -1.442695, %v1534_v15  ;;  %s1649_s22 = sshll.u32 %s2179_s4, 4  ;;  %s1650_s22 = int_to_ptr.vmem [resolvable:$true] %s1649_s22 }
 0xc8e   :  { %v1891_v16 = vpop.f32.mrf.mxu0  ;;  %s2125_s24 = scalar_lea.vmem %s1650_s22, 256  ;;  %p2130_p8 = scmp.lt.s32.totalorder %s1650_s22, %s1650_s22 }
 0xc8f   :  { %1979 = vpow2.f32 %v1705_v18  ;;  %p2126_p7 = scmp.ne.s32.totalorder %s1650_s22, %s2125_s24  ;;  %p2131_p9 = scmp.lt.s32.totalorder %s2125_s24, %s2125_s24 }
 0xc91   :  { %p2132_p10 = por %p2131_p9, %p2130_p8 }
 0xc93   :  { %p2133_p11 = pnand %p2132_p10, %p2126_p7 }
 0xc98   :  { %v1978_v19 = vpop.eup %1977 }
 0xc99   :  { %v1544_v7 = vadd.f32 1.0, %v1978_v19 }
 0xc9b   :  { %1981 = vrcp.f32 %v1544_v7 }
 0xc9c   :  { %v1980_v20 = vpop.eup %1979 }
 0xc9d   :  { %v1545_v21 = vadd.f32 1.0, %v1980_v20 }
 0xc9f   :  { %1983 = vrcp.f32 %v1545_v21 }
 0xca8   :  { %v1982_v22 = vpop.eup %1981 }
 0xca9   :  { %v1550_v25 = vmul.f32 %v1982_v22, %v1531_v13 }
 0xcac   :  { %v1984_v23 = vpop.eup %1983 }
 0xcad   :  { %v1551_v27 = vmul.f32 %v1984_v23, %v1534_v15 }
 0xcfb   :  { %v1555_v24 = vpop.permute.xlu0 %1554 }
 0xcfc   :  { %v1560_v32 = vmul.f32 %v1555_v24, %v1550_v25 }
 0xcff   :  { %v1557_v29 = vpop.permute.xlu1 %1556 }
 0xd00   :  { %v1561_v28 = vmul.f32 %v1557_v29, %v1551_v27 }
 0xd02   :  { %v1562_v33 = vpack.c.bf16 %v1561_v28, %v1560_v32 }
 0xd04   :  { %1901 = vmatmul.mubr.msk.bf16.vlgmr.msra.gmra.mxu1 %vm1595_vm5, %v1562_v33 }
 0xdc4   :  { %v1633_v30 = vpop.f32.mrf.mxu1 }
 0xdc5   :  { %v1640_v34 = vadd.f32 %v1633_v30, %v2472_v51 }
 0xdc6   :  { %v1902_v35 = vpop.f32.mrf.mxu1 }
 0xdc7   :  { %1642 = vst.msk [vmem:[#allocation14] sm:$0xff] %vm145_vm0, %v1640_v34 }
 0xdc8   :  { %v1636_v36 = vpop.f32.mrf.mxu1 }
 0xdc9   :  { %v1641_v37 = vadd.f32 %v1636_v36, %v2477_v55 }
 0xdca   :  { %v1903_v38 = vpop.f32.mrf.mxu1 }
 0xdcb   :  { %1643 = vst.msk [vmem:[#allocation14 + $0x8] sm:$0xff] %vm145_vm0, %v1641_v37 }
 0xdcc   :  { %2136 = shalt.err (!%p2133_p11)
}
 0xdcd   :  { %1655 = dma.vmem_to_hbm [thread:$0]  %s1650_s22, 256, %s2525_s11, [#allocation4], %s2160_s2, %s2160_s2, %s2161_s14  }
 0xdce   :  { %2153 = dma.done.wait [#allocation4], 256  }
 0xdcf   :  { %2154 = vsyncadd [#allocation4], 4294967040 }
 0xdd0   :  { %1659 = vsyncpa [#allocation3], 1 }
 0xdd1   :  { %1660 = vsyncpa [#allocation6], 1 }
 0xdd2   :  { %1661 = vsyncpa [#allocation9], 1 }
 0xdd3   :  { %1662 = vsyncpa [#allocation12], 1 }
 0xdd4   :  { %1663 = vsyncpa [#allocation4], 1 }

</bundles_post_ra>
